<compile_context>
chip_gen: v7x
topology: tpu7x:2x2x1
jax: 0.10.0
libtpu: 0.0.40
codegen_flags: <defaults>
</compile_context>

<pallas_src>
import functools

import jax
import jax.numpy as jnp
from jax import lax
from jax.experimental import pallas as pl
from jax.experimental.pallas import tpu as pltpu


def _round_up(x, m):
    return ((x + m - 1) // m) * m


# ---------------------------------------------------------------------------
# In-kernel helpers
# ---------------------------------------------------------------------------
def _log_softmax(x):
    # numerically stable log-softmax over axis=1 (class axis / lanes)
    m = jnp.max(x, axis=1, keepdims=True)
    return x - (m + jnp.log(jnp.sum(jnp.exp(x - m), axis=1, keepdims=True)))


def _ce_rows(logits, labels, valid, col):
    # per-row NLL of `labels` under log_softmax(logits), masked by `valid`
    lsm = _log_softmax(logits)
    onehot = (col == labels).astype(jnp.float32)
    return -jnp.sum(onehot * lsm, axis=1, keepdims=True) * valid  # (tm, 1)


def _write_partial(out_ref, rows):
    # reduce a (tm, 1) column of per-row losses to one per-tile partial sum
    # and write it lane-dense (tiny (1, 8, 128) block, read back as [.,0,0])
    part = jnp.sum(rows, axis=0, keepdims=True)                   # (1, 1)
    out_ref[...] = jnp.broadcast_to(part.reshape(1, 1, 1), out_ref.shape)


def _kd_rows(mode, tau, t, kd, valid, col, n):
    # distillation per-row losses given teacher logits `t` (f32, (tm, n))
    if mode == "soft":
        inv_tau = 1.0 / tau                                       # trace-time constant
        log_p = _log_softmax(kd * inv_tau)                        # student dist-token
        log_q = _log_softmax(t * inv_tau)                         # teacher
        q = jnp.exp(log_q)                                        # exact, no approx recip
        return jnp.sum(q * (log_q - log_p), axis=1, keepdims=True) * valid
    # "hard": argmax (first maximal index) of the teacher logits
    is_max = t == jnp.max(t, axis=1, keepdims=True)
    t_lbl = jnp.min(jnp.where(is_max, col, n), axis=1, keepdims=True)
    return _ce_rows(kd, t_lbl, valid, col)


# ---------------------------------------------------------------------------
# Fast path: whole teacher weight panel resident in VMEM, grid over batch only
# ---------------------------------------------------------------------------
def _fused_resident_kernel(x_ref, w_ref, b_ref, cls_ref, kd_ref, lbl_ref,
                           ce_o_ref, kd_o_ref, *, mode, tau, batch, tm):
    i = pl.program_id(0)
    n = cls_ref.shape[1]

    row = lax.broadcasted_iota(jnp.int32, (tm, 1), 0) + i * tm
    valid = (row < batch).astype(jnp.float32)                     # (tm, 1)
    col = lax.broadcasted_iota(jnp.int32, (tm, n), 1)

    # ---- base cross-entropy on the class-token logits
    cls = cls_ref[...].astype(jnp.float32)
    _write_partial(ce_o_ref, _ce_rows(cls, lbl_ref[...], valid, col))

    # ---- teacher forward: per-tile bf16 cast of x, f32 MXU accumulation
    t = jnp.dot(x_ref[...].astype(jnp.bfloat16), w_ref[...],
                preferred_element_type=jnp.float32) + b_ref[...]
    kd = kd_ref[...].astype(jnp.float32)
    _write_partial(kd_o_ref, _kd_rows(mode, tau, t, kd, valid, col, n))


# ---------------------------------------------------------------------------
# Fallback: teacher matmul tiled over D (innermost, "arbitrary") + epilogue
# ---------------------------------------------------------------------------
def _fused_tiled_kernel(x_ref, w_ref, b_ref, cls_ref, kd_ref, lbl_ref,
                        ce_o_ref, kd_o_ref, acc_ref, *, mode, tau, batch, tm):
    k = pl.program_id(1)

    @pl.when(k == 0)
    def _():
        acc_ref[...] = jnp.zeros_like(acc_ref)

    acc_ref[...] += jnp.dot(x_ref[...].astype(jnp.bfloat16), w_ref[...],
                            preferred_element_type=jnp.float32)

    @pl.when(k == pl.num_programs(1) - 1)
    def _():
        i = pl.program_id(0)
        n = cls_ref.shape[1]
        row = lax.broadcasted_iota(jnp.int32, (tm, 1), 0) + i * tm
        valid = (row < batch).astype(jnp.float32)
        col = lax.broadcasted_iota(jnp.int32, (tm, n), 1)

        cls = cls_ref[...].astype(jnp.float32)
        _write_partial(ce_o_ref, _ce_rows(cls, lbl_ref[...], valid, col))

        t = acc_ref[...] + b_ref[...]
        kd = kd_ref[...].astype(jnp.float32)
        _write_partial(kd_o_ref, _kd_rows(mode, tau, t, kd, valid, col, n))


# ---------------------------------------------------------------------------
# CE-only kernel (distillation_type == 'none')
# ---------------------------------------------------------------------------
def _ce_only_kernel(cls_ref, lbl_ref, ce_o_ref, *, batch, tm):
    i = pl.program_id(0)
    n = cls_ref.shape[1]
    row = lax.broadcasted_iota(jnp.int32, (tm, 1), 0) + i * tm
    valid = (row < batch).astype(jnp.float32)
    col = lax.broadcasted_iota(jnp.int32, (tm, n), 1)
    cls = cls_ref[...].astype(jnp.float32)
    _write_partial(ce_o_ref, _ce_rows(cls, lbl_ref[...], valid, col))


# ---------------------------------------------------------------------------
# Sizing helpers
# ---------------------------------------------------------------------------
def _pick_tm(B, tm):
    b8 = _round_up(B, 8)
    TM = min(tm, b8)
    if b8 >= 256:
        # keep at least 2 batch tiles so v7x's 2 TensorCores both get work
        TM = min(TM, _round_up(b8 // 2, 8))
    TM = max(_round_up(TM, 8), 8)
    b_pad = _round_up(B, TM)
    return TM, b_pad, b_pad // TM


def _pick_tk(D, tk):
    # prefer a 128-multiple that divides D exactly (no padding of x along D)
    if D % 128 == 0:
        cand = (max(tk, 128) // 128) * 128
        while cand >= 128:
            if D % cand == 0:
                return cand, D
            cand -= 128
        return 128, D
    TK = _round_up(min(max(tk, 128), _round_up(D, 128)), 128)
    return TK, _round_up(D, TK)


def _vmem_limit(TM, TK, N, x_bytes):
    # footprint-derived scoped-VMEM request; clamped to 48 MiB so we never ask
    # for all of v7x's 64 MiB physical per-TC VMEM
    n_lane = max(_round_up(N, 128), 128)
    foot = (2 * TM * TK * x_bytes          # x double buffers (native dtype)
            + 2 * TK * N * 2               # w buffers (bf16)
            + 4 * TM * n_lane * 4          # cls + kd double buffers (f32)
            + 2 * TM * 128 * 4             # labels
            + 2 * TM * n_lane * 4          # teacher logits / accumulator / temps
            + 4 * 8 * 128 * 4)             # partial-sum outputs
    want = int(foot * 1.5) + (4 << 20)
    return max(16 << 20, min(want, 48 << 20))


def _pad_rows(a, b_pad, fill=0):
    B = a.shape[0]
    if b_pad == B:
        return a
    return jnp.pad(a, ((0, b_pad - B),) + ((0, 0),) * (a.ndim - 1),
                   constant_values=fill)


# ---------------------------------------------------------------------------
# DistillationLoss.forward equivalent
# ---------------------------------------------------------------------------
def distillation_loss(inputs, outputs, labels, teacher_params,
                      distillation_type="soft", alpha=0.5, tau=2.0,
                      tm=256, tk=2048):
    assert distillation_type in ("none", "soft", "hard")
    outputs_kd = None
    if isinstance(outputs, (tuple, list)):
        outputs, outputs_kd = outputs

    B, N = outputs.shape
    TM, b_pad, g_b = _pick_tm(B, tm)

    labels_p = _pad_rows(labels.reshape(-1, 1).astype(jnp.int32), b_pad)
    cls_p = _pad_rows(outputs, b_pad)     # zero rows are masked by `valid`

    if distillation_type == "none":
        ce_parts = pl.pallas_call(
            functools.partial(_ce_only_kernel, batch=B, tm=TM),
            out_shape=jax.ShapeDtypeStruct((g_b, 8, 128), jnp.float32),
            grid=(g_b,),
            in_specs=[pl.BlockSpec((TM, N), lambda i: (i, 0)),
                      pl.BlockSpec((TM, 1), lambda i: (i, 0))],
            out_specs=pl.BlockSpec((1, 8, 128), lambda i: (i, 0, 0)),
            compiler_params=pltpu.CompilerParams(
                dimension_semantics=("parallel",),
                vmem_limit_bytes=_vmem_limit(TM, 0, N, 4)),
        )(cls_p, labels_p)
        return jnp.sum(ce_parts[:, 0, 0]) / B

    if outputs_kd is None:
        raise ValueError(
            "When knowledge distillation is enabled, the model is expected to "
            "return a Tuple[Tensor, Tensor] with the output of the class_token "
            "and the dist_token")

    # teacher forward runs under torch.no_grad()  ->  stop_gradient on params
    w_t, b_t = teacher_params
    w_t = lax.stop_gradient(w_t)
    b_t = lax.stop_gradient(b_t)

    x_flat = inputs.reshape(inputs.shape[0], -1)     # native dtype, no cast here
    D = x_flat.shape[1]
    x_bytes = jnp.dtype(x_flat.dtype).itemsize

    # decide: weight panel fully resident (g_k = 1) vs. tiled-D fallback
    n_lane = max(_round_up(N, 128), 128)
    resident_foot = (2 * D * N * 2 + 2 * TM * D * x_bytes
                     + 4 * TM * n_lane * 4 + TM * n_lane * 4)
    resident = resident_foot <= (24 << 20)
    if resident:
        TK, d_pad, g_k = D, D, 1
    else:
        TK, d_pad = _pick_tk(D, tk)
        g_k = d_pad // TK

    # x: only padded when strictly required (partial batch tile / tiled-D with
    # non-divisible D); never cast in the wrapper.
    x_p = x_flat
    if b_pad != B or d_pad != D:
        x_p = jnp.pad(x_flat, ((0, b_pad - B), (0, d_pad - D)))
    w_p = w_t.astype(jnp.bfloat16)                   # small one-time cast
    if d_pad != D:
        w_p = jnp.pad(w_p, ((0, d_pad - D), (0, 0)))
    b_p = b_t.reshape(1, -1).astype(jnp.float32)
    kd_p = _pad_rows(outputs_kd, b_pad)

    common = dict(mode=distillation_type, tau=float(tau), batch=B, tm=TM)
    out_shape = (jax.ShapeDtypeStruct((g_b, 8, 128), jnp.float32),
                 jax.ShapeDtypeStruct((g_b, 8, 128), jnp.float32))
    vlim = _vmem_limit(TM, TK, N, x_bytes)

    if resident:
        ce_parts, kd_parts = pl.pallas_call(
            functools.partial(_fused_resident_kernel, **common),
            out_shape=out_shape,
            grid=(g_b,),
            in_specs=[
                pl.BlockSpec((TM, D), lambda i: (i, 0)),      # x tile (native dtype)
                pl.BlockSpec((D, N), lambda i: (0, 0)),       # W: resident
                pl.BlockSpec((1, N), lambda i: (0, 0)),       # bias
                pl.BlockSpec((TM, N), lambda i: (i, 0)),      # class logits
                pl.BlockSpec((TM, N), lambda i: (i, 0)),      # dist logits
                pl.BlockSpec((TM, 1), lambda i: (i, 0)),      # labels
            ],
            out_specs=(pl.BlockSpec((1, 8, 128), lambda i: (i, 0, 0)),
                       pl.BlockSpec((1, 8, 128), lambda i: (i, 0, 0))),
            compiler_params=pltpu.CompilerParams(
                dimension_semantics=("parallel",),
                vmem_limit_bytes=vlim),
        )(x_p, w_p, b_p, cls_p, kd_p, labels_p)
    else:
        ce_parts, kd_parts = pl.pallas_call(
            functools.partial(_fused_tiled_kernel, **common),
            out_shape=out_shape,
            grid=(g_b, g_k),
            in_specs=[
                pl.BlockSpec((TM, TK), lambda i, k: (i, k)),     # x tile
                pl.BlockSpec((TK, N), lambda i, k: (k, 0)),      # W tile
                pl.BlockSpec((1, N), lambda i, k: (0, 0)),       # bias
                pl.BlockSpec((TM, N), lambda i, k: (i, 0)),      # class logits
                pl.BlockSpec((TM, N), lambda i, k: (i, 0)),      # dist logits
                pl.BlockSpec((TM, 1), lambda i, k: (i, 0)),      # labels
            ],
            out_specs=(pl.BlockSpec((1, 8, 128), lambda i, k: (i, 0, 0)),
                       pl.BlockSpec((1, 8, 128), lambda i, k: (i, 0, 0))),
            scratch_shapes=[pltpu.VMEM((TM, N), jnp.float32)],   # teacher acc
            compiler_params=pltpu.CompilerParams(
                dimension_semantics=("parallel", "arbitrary"),
                vmem_limit_bytes=vlim),
        )(x_p, w_p, b_p, cls_p, kd_p, labels_p)

    # normalization / combine hoisted here, using LOGICAL sizes
    base_loss = jnp.sum(ce_parts[:, 0, 0]) / B
    kd_sum = jnp.sum(kd_parts[:, 0, 0])
    if distillation_type == "soft":
        dist_loss = kd_sum * (tau * tau) / (B * N)   # outputs_kd.numel()
    else:
        dist_loss = kd_sum / B                       # CE mean reduction
    return base_loss * (1.0 - alpha) + dist_loss * alpha


# ---------------------------------------------------------------------------
# Pure-JAX reference (correctness check only; mirrors the bf16 MXU inputs)
# ---------------------------------------------------------------------------
def _ref_loss(inputs, outputs, labels, teacher_params, distillation_type, alpha, tau):
    if isinstance(outputs, (tuple, list)):
        logits, kd = outputs
    else:
        logits, kd = outputs, None
    lsm = jax.nn.log_softmax(logits, axis=1)
    base = -jnp.mean(lsm[jnp.arange(logits.shape[0]), labels])
    if distillation_type == "none":
        return base
    w, b = teacher_params
    xq = inputs.reshape(inputs.shape[0], -1).astype(jnp.bfloat16)
    wq = w.astype(jnp.bfloat16)
    t = jnp.dot(xq, wq, preferred_element_type=jnp.float32) + b.reshape(1, -1)
    if distillation_type == "soft":
        lp = jax.nn.log_softmax(kd / tau, axis=1)
        lq = jax.nn.log_softmax(t / tau, axis=1)
        d = jnp.sum(jnp.exp(lq) * (lq - lp)) * (tau * tau) / kd.size
    else:
        tl = jnp.argmax(t, axis=1)
        lsm_kd = jax.nn.log_softmax(kd, axis=1)
        d = -jnp.mean(lsm_kd[jnp.arange(kd.shape[0]), tl])
    return base * (1.0 - alpha) + d * alpha


if __name__ == "__main__":
    key = jax.random.PRNGKey(0)
    k1, k2, k3, k4, k5, k6 = jax.random.split(key, 6)

    B, C, H, W = 8, 4, 16, 16
    NUM_CLASSES = 32
    D = C * H * W
    ALPHA, TAU = 0.5, 2.0

    inputs = jax.random.normal(k1, (B, C, H, W), jnp.float32)           # teacher input (NCHW)
    outputs_cls = jax.random.normal(k2, (B, NUM_CLASSES), jnp.float32)  # class_token logits
    outputs_kd = jax.random.normal(k3, (B, NUM_CLASSES), jnp.float32)   # dist_token logits
    labels = jax.random.randint(k4, (B,), 0, NUM_CLASSES, jnp.int32)

    # deterministic synthetic teacher (linear classifier) parameters
    w_t = jax.random.normal(k5, (D, NUM_CLASSES), jnp.float32) * 0.02
    b_t = jax.random.normal(k6, (1, NUM_CLASSES), jnp.float32) * 0.1
    teacher_params = (w_t, b_t)

    for mode in ("none", "soft", "hard"):
        outs = outputs_cls if mode == "none" else (outputs_cls, outputs_kd)
        got = distillation_loss(inputs, outs, labels, teacher_params, mode, ALPHA, TAU)
        got = jax.block_until_ready(got)
        want = _ref_loss(inputs, outs, labels, teacher_params, mode, ALPHA, TAU)
        assert abs(float(got) - float(want)) < 2e-3 + 2e-3 * abs(float(want)), (
            mode, float(got), float(want))

    print("KERNEL_OK")
</pallas_src>

<mosaic_0001>
module attributes {stable_mosaic.version = 11 : i64} {
  func.func @_ce_only_kernel(%arg0: i32, %arg1: memref<8x32xf32, #tpu.memory_space<vmem>>, %arg2: memref<8x1xi32, #tpu.memory_space<vmem>>, %arg3: memref<1x8x128xf32, #tpu.memory_space<vmem>>) attributes {dimension_semantics = [#tpu.dimension_semantics<parallel>], iteration_bounds = array<i64: 1>, scalar_prefetch = 0 : i64, scratch_operands = 0 : i64, tpu.core_type = #tpu.core_type<tc>, window_params = [{transform_indices = @transform_0, window_bounds = array<i64: 8, 32>}, {transform_indices = @transform_1, window_bounds = array<i64: 8, 1>}, {transform_indices = @transform_2, window_bounds = array<i64: 1, 8, 128>}]} {
    %0 = tpu.iota {dimensions = array<i32: 0>} : vector<8x1xi32>
    %c8_i32 = arith.constant 8 : i32
    %1 = arith.muli %arg0, %c8_i32 : i32
    %2 = vector.broadcast %1 : i32 to vector<8x1xi32>
    %3 = arith.addi %0, %2 : vector<8x1xi32>
    %c8_i32_0 = arith.constant 8 : i32
    %4 = vector.broadcast %c8_i32_0 : i32 to vector<8x1xi32>
    %5 = arith.cmpi slt, %3, %4 : vector<8x1xi32>
    %6 = arith.extui %5 : vector<8x1xi1> to vector<8x1xi32>
    %7 = arith.sitofp %6 : vector<8x1xi32> to vector<8x1xf32>
    %8 = tpu.iota {dimensions = array<i32: 1>} : vector<8x32xi32>
    %c0 = arith.constant 0 : index
    %c0_1 = arith.constant 0 : index
    %9 = vector.load %arg1[%c0, %c0_1] : memref<8x32xf32, #tpu.memory_space<vmem>>, vector<8x32xf32>
    %c0_2 = arith.constant 0 : index
    %c0_3 = arith.constant 0 : index
    %10 = vector.load %arg2[%c0_2, %c0_3] : memref<8x1xi32, #tpu.memory_space<vmem>>, vector<8x1xi32>
    %cst = arith.constant dense<0xFF800000> : vector<8xf32>
    %11 = vector.multi_reduction <maximumf>, %9, %cst [1] : vector<8x32xf32> to vector<8xf32>
    %12 = vector.shape_cast %11 : vector<8xf32> to vector<8x1xf32>
    %13 = vector.broadcast %12 : vector<8x1xf32> to vector<8x32xf32>
    %14 = arith.subf %9, %13 : vector<8x32xf32>
    %15 = math.exp %14 : vector<8x32xf32>
    %cst_4 = arith.constant dense<0.000000e+00> : vector<8xf32>
    %16 = vector.multi_reduction <add>, %15, %cst_4 [1] : vector<8x32xf32> to vector<8xf32>
    %17 = vector.shape_cast %16 : vector<8xf32> to vector<8x1xf32>
    %18 = math.log %17 : vector<8x1xf32>
    %19 = arith.addf %12, %18 : vector<8x1xf32>
    %20 = vector.broadcast %19 : vector<8x1xf32> to vector<8x32xf32>
    %21 = arith.subf %9, %20 : vector<8x32xf32>
    %22 = vector.broadcast %10 : vector<8x1xi32> to vector<8x32xi32>
    %23 = arith.cmpi eq, %8, %22 : vector<8x32xi32>
    %24 = arith.extui %23 : vector<8x32xi1> to vector<8x32xi32>
    %25 = arith.sitofp %24 : vector<8x32xi32> to vector<8x32xf32>
    %26 = arith.mulf %25, %21 : vector<8x32xf32>
    %cst_5 = arith.constant dense<0.000000e+00> : vector<8xf32>
    %27 = vector.multi_reduction <add>, %26, %cst_5 [1] : vector<8x32xf32> to vector<8xf32>
    %28 = vector.shape_cast %27 : vector<8xf32> to vector<8x1xf32>
    %cst_6 = arith.constant 0.000000e+00 : f32
    %29 = vector.broadcast %cst_6 : f32 to vector<8x1xf32>
    %30 = arith.subf %29, %28 : vector<8x1xf32>
    %31 = arith.mulf %30, %7 : vector<8x1xf32>
    %cst_7 = arith.constant dense<0.000000e+00> : vector<1xf32>
    %32 = vector.multi_reduction <add>, %31, %cst_7 [0] : vector<8x1xf32> to vector<1xf32>
    %33 = vector.shape_cast %32 : vector<1xf32> to vector<1x1xf32>
    %34 = vector.shape_cast %33 : vector<1x1xf32> to vector<1x1x1xf32>
    %35 = vector.shape_cast %34 : vector<1x1x1xf32> to vector<1x1x1xf32>
    %36 = vector.broadcast %35 : vector<1x1x1xf32> to vector<1x8x128xf32>
    %c0_8 = arith.constant 0 : index
    %c0_9 = arith.constant 0 : index
    %c0_10 = arith.constant 0 : index
    %37 = vector.load %arg3[%c0_8, %c0_9, %c0_10] : memref<1x8x128xf32, #tpu.memory_space<vmem>>, vector<1x8x128xf32>
    tpu.vector_store %arg3[%c0_8, %c0_9, %c0_10], %36 {strides = array<i32>} : memref<1x8x128xf32, #tpu.memory_space<vmem>>, vector<1x8x128xf32>,
    return
  }
  func.func @transform_0(%arg0: i32) -> (i32, i32) {
    %c0_i32 = arith.constant 0 : i32
    %c0_i32_0 = arith.constant 0 : i32
    return %arg0, %c0_i32 : i32, i32
  }
  func.func @transform_1(%arg0: i32) -> (i32, i32) {
    %c0_i32 = arith.constant 0 : i32
    %c0_i32_0 = arith.constant 0 : i32
    return %arg0, %c0_i32 : i32, i32
  }
  func.func @transform_2(%arg0: i32) -> (i32, i32, i32) {
    %c0_i32 = arith.constant 0 : i32
    %c0_i32_0 = arith.constant 0 : i32
    %c0_i32_1 = arith.constant 0 : i32
    return %arg0, %c0_i32, %c0_i32_0 : i32, i32, i32
  }
}

</mosaic_0001>

<bundles_post_ra>
// kernel: tpu_custom_call.1
= control target key start
LH: loop header
LB: loop body
LE: loop exit
PB: predicated region body
PF: predicated region fallthrough
CT: control target
= control target key end

     0   :  { %vm24_vm0 = vcmask 261120   ;;  %s144_s0 = inlined_call_operand.vmem [shape: f32[8,32], index: 0, kind: input, shape index: {}]   ;;  %s145_s1 = inlined_call_operand.vmem [shape: s32[8,1], index: 1, kind: input, shape index: {}]   ;;  %s146_s2 = inlined_call_operand.hbm [shape: f32[1,8,128], index: 2, kind: output, shape index: {}]  }
   0x1   :  { %v22_v0 = vld [vmem:[%s144_s0] sm:$0xff] }
   0x2   :  { %7 = vsyncpa [#allocation3], 0  ;;  %v25_v1 = vsel %vm24_vm0, %v22_v0, -inf  ;;  %v23_v2 = vld [vmem:[%s145_s1] sm:$0xff]  ;;  %v105_v3 = vmov 0   ;;  %v20_v10 = vlaneseq  ;;  %v106_v16 = vmov 0.0  }
   0x3   :  { %26 = vmax.xlane.f32.xlu0 %v25_v1  ;;  %75 = vset.pattern.permute.xlu1 %v105_v3  ;;  %s107_s0 = smov [#allocation2]  }
   0x4   :  { %76 = vset.pattern.permute.xlu0 %v105_v3  ;;  %39 = vperm.xlu1 %75, %v23_v2   ;;  %v21_v11 = vand.u32 127, %v20_v10  ;;  %s63_s1 = sshll.u32 %s107_s0, 4  ;;  %s64_s1 = int_to_ptr.vmem [resolvable:$true] %s63_s1 }
   0x5   :  { %s81_s13 = scalar_lea.vmem %s64_s1, 128  ;;  %p86_p1 = scmp.lt.s32.totalorder %s64_s1, %s64_s1 }
   0x6   :  { %p82_p0 = scmp.ne.s32.totalorder %s64_s1, %s81_s13  ;;  %p87_p2 = scmp.lt.s32.totalorder %s81_s13, %s81_s13 }
   0x8   :  { %p88_p3 = por %p87_p2, %p86_p1 }
   0xa   :  { %p89_p4 = pnand %p88_p3, %p82_p0 }
  0x83   :  { %v40_v12 = vpop.permute.xlu1 %39 }
  0x84   :  { %vm41_vm1 = vcmp.eq.s32.totalorder %v21_v11, %v40_v12 }
  0x85   :  { %v71_v17 = vsel %vm41_vm1, 1.0, %v106_v16 }
  0x90   :  { %v27_v4 = vpop.xlane.xlu0 %26 }
  0x91   :  { %v28_v5 = vsub.f32 %v22_v0, %v27_v4 }
  0x93   :  { %v29_v6 = vmul.f32 1.442695, %v28_v5 }
  0x95   :  { %77 = vpow2.f32 %v29_v6 }
  0x9f   :  { %v78_v7 = vpop.eup %77 }
  0xa0   :  { %v31_v8 = vsel %vm24_vm0, %v78_v7, 0.0 }
  0xa1   :  { %32 = vadd.xlane.f32.xlu0 %v31_v8 }
 0x12e   :  { %v33_v9 = vpop.xlane.xlu0 %32 }
 0x12f   :  { %79 = vlog2.f32 %v33_v9 }
 0x139   :  { %v80_v13 = vpop.eup %79 }
 0x13a   :  { %v35_v14 = vmul.f32 0.6931472, %v80_v13 }
 0x13c   :  { %v36_v15 = vadd.f32 %v35_v14, %v27_v4 }
 0x13e   :  { %v37_v18 = vsub.f32 %v22_v0, %v36_v15 }
 0x140   :  { %v44_v19 = vmul.f32 %v71_v17, %v37_v18 }
 0x142   :  { %v45_v20 = vsel %vm24_vm0, %v44_v19, 0.0 }
 0x143   :  { %46 = vadd.xlane.f32.xlu1 %v45_v20 }
 0x1d0   :  { %v47_v21 = vpop.xlane.xlu1 %46 }
 0x1d1   :  { %v48_v22 = vsub.f32 0.0, %v47_v21 }
 0x1d3   :  { %v50_v23 = vrot.slane %v48_v22, 4 }
 0x1d5   :  { %v51_v24 = vadd.f32 %v50_v23, %v48_v22 }
 0x1d7   :  { %v52_v25 = vrot.slane %v51_v24, 2 }
 0x1d9   :  { %v53_v26 = vadd.f32 %v52_v25, %v51_v24 }
 0x1db   :  { %v54_v27 = vrot.slane %v53_v26, 1 }
 0x1dd   :  { %v55_v28 = vadd.f32 %v54_v27, %v53_v26 }
 0x1df   :  { %56 = vst [vmem:[#allocation2] sm:$0xff] %v55_v28 }
 0x1e0   :  { %92 = shalt.err (!%p89_p4)
}
 0x1e1   :  { %s93_s16 = scalar_lea.hbm %s146_s2, 128 }
 0x1e2   :  { %p94_p5 = scmp.ne.s32.totalorder %s146_s2, %s93_s16  ;;  %p97_p6 = scmp.lt.u32.totalorder %s93_s16, %s146_s2 }
 0x1e4   :  { %p99_p7 = pnand %p97_p6, %p94_p5 }
 0x1e6   :  { %102 = shalt.err (!%p99_p7)
}
 0x1e7   :  { %66 = dma.vmem_to_hbm [thread:$0]  %s64_s1, 128, %s146_s2, [#allocation3]  }
 0x1e8   :  { %103 = dma.done.wait [#allocation3], 128  }
 0x1e9   :  { %104 = vsyncadd [#allocation3], 4294967168 }
 0x1ea   :  { %70 = vsyncpa [#allocation3], 1 }

</bundles_post_ra>
